<compile_context>
chip_gen: v7x
topology: tpu7x:2x2x1
jax: 0.10.0
libtpu: 0.0.40
codegen_flags: <defaults>
</compile_context>

<pallas_src>
import functools

import jax
import jax.numpy as jnp
from jax.experimental import pallas as pl
from jax.experimental.pallas import tpu as pltpu

_LANE = 128


def _decoder_step_kernel(
    uhs_ref,      # (B, F, A)  f32   precomputed U(features)
    feat_ref,     # (B, F, E)  bf16  encoder features (context matmul operand)
    gemb_ref,     # (S, B, 4D) f32   precomputed emb @ w_ih_e.T + b_ih + b_hh
    Ww_ref,       # (D, A)     bf16
    Wb_ref,       # (1, A)     f32
    Aw_ref,       # (1, A)     f32
    Ab_ref,       # (1, 1)     f32
    Wch_ref,      # (E+D, 4D)  bf16  stacked [w_ih_context ; w_hh]
    h0_ref,       # (B, D)     f32
    c0_ref,       # (B, D)     f32
    h_out_ref,    # (S, B, D)  f32   resident output (fc applied outside)
    alpha_ref,    # (S, B, Fp) f32   resident output, lane-padded to 128
    h_sc, c_sc,   # (B, D)     f32   VMEM scratch, persist across grid steps
):
    s = pl.program_id(0)

    # init_hidden_state(features): precomputed on the wrapper side, copied once.
    # NOTE: this init must stay strictly before the first h_sc/c_sc read.
    @pl.when(s == 0)
    def _():
        h_sc[...] = h0_ref[...]
        c_sc[...] = c0_ref[...]

    h = h_sc[...]                                           # (B, D) f32
    c = c_sc[...]                                           # (B, D) f32
    B, D = h.shape
    F = uhs_ref.shape[1]

    # --- Attention (u_hs is loop-invariant and precomputed) ---
    w_ah = jnp.dot(h.astype(Ww_ref.dtype), Ww_ref[...],
                   preferred_element_type=jnp.float32) + Wb_ref[...]       # (B, A)
    comb = jnp.tanh(uhs_ref[...] + w_ah[:, None, :])                       # (B, F, A)
    # scores: kept as VPU-mul + reduce; a (A,1) matmul would still need the same
    # lane relayout for the (B, F) result at these shapes.
    scores = jnp.sum(comb * Aw_ref[...][None, :, :], axis=-1) + Ab_ref[...]  # (B, F)
    scores = scores - jnp.max(scores, axis=1, keepdims=True)
    es = jnp.exp(scores)
    alpha = es * pl.reciprocal(jnp.sum(es, axis=1, keepdims=True),
                               approx=True)                                # (B, F)
    # context on the MXU (batched matmul) instead of VPU mul + XLU reduce.
    context = jnp.einsum(
        'bqf,bfe->bqe',
        alpha[:, None, :].astype(feat_ref.dtype), feat_ref[...],
        preferred_element_type=jnp.float32)[:, 0, :]                       # (B, E)

    # --- LSTMCell: embedding gate term precomputed; one fused matmul remains ---
    ch = jnp.concatenate([context, h], axis=-1).astype(Wch_ref.dtype)      # (B, E+D)
    gates = gemb_ref[s] + jnp.dot(ch, Wch_ref[...],
                                  preferred_element_type=jnp.float32)      # (B, 4D)
    # NOTE: for real configs make D a multiple of 128 so these slices are
    # lane-aligned (free); at D=32 they are cheap lane selects.
    i_g = jax.nn.sigmoid(gates[:, 0 * D:1 * D])
    f_g = jax.nn.sigmoid(gates[:, 1 * D:2 * D])
    g_g = jnp.tanh(gates[:, 2 * D:3 * D])
    o_g = jax.nn.sigmoid(gates[:, 3 * D:4 * D])
    c_new = f_g * c + i_g * g_g
    h_new = o_g * jnp.tanh(c_new)

    # Resident outputs: h for the batched fc afterwards, lane-padded alpha.
    h_out_ref[s] = h_new
    Fp = alpha_ref.shape[2]
    if Fp > F:
        alpha_w = jnp.concatenate(
            [alpha, jnp.zeros((B, Fp - F), jnp.float32)], axis=-1)
    else:
        alpha_w = alpha
    alpha_ref[s] = alpha_w

    h_sc[...] = h_new
    c_sc[...] = c_new


def decoder_rnn_forward(params, features, captions):
    """Pallas implementation of DecoderRNN.forward (eval mode)."""
    B, F, E = features.shape
    S = captions.shape[1] - 1
    embed = params["embedding"].shape[1]
    D = params["init_h_w"].shape[0]
    A = params["U_w"].shape[0]
    V = params["fc_w"].shape[0]
    Fp = max(_LANE, ((F + _LANE - 1) // _LANE) * _LANE)   # lane-dense alpha slab

    cdt = jnp.bfloat16  # compute dtype for in-kernel MXU operands (f32 accumulate)

    # ---------- loop-invariant precomputation (plain XLA, done once) ----------
    emb_seq = jnp.transpose(params["embedding"][captions[:, :S]], (1, 0, 2))  # (S,B,embed)
    gates_emb = (emb_seq.reshape(S * B, embed) @ params["w_ih"][:, :embed].T
                 + params["b_ih"] + params["b_hh"]).reshape(S, B, 4 * D)

    u_hs = (features.reshape(B * F, E) @ params["U_w"].T
            + params["U_b"]).reshape(B, F, A)

    mean_f = features.mean(axis=1)
    h0 = mean_f @ params["init_h_w"].T + params["init_h_b"]
    c0 = mean_f @ params["init_c_w"].T + params["init_c_b"]

    # stacked gate weight for the fused [context, h] matmul: (E+D, 4D)
    W_ch = jnp.concatenate([params["w_ih"][:, embed:].T, params["w_hh"].T], axis=0)

    inputs = (
        u_hs.astype(jnp.float32),
        features.astype(cdt),
        gates_emb.astype(jnp.float32),
        params["W_w"].T.astype(cdt),                   # (D, A)
        params["W_b"][None, :].astype(jnp.float32),    # (1, A)
        params["A_w"].astype(jnp.float32),             # (1, A)
        params["A_b"].reshape(1, 1).astype(jnp.float32),
        W_ch.astype(cdt),                              # (E+D, 4D)
        h0.astype(jnp.float32),
        c0.astype(jnp.float32),
    )

    # Everything is VMEM-resident across the whole sequence (constant index_map).
    def resident(x):
        n = x.ndim
        return pl.BlockSpec(x.shape, lambda s, _n=n: (0,) * _n)

    in_specs = [resident(x) for x in inputs]

    out_shape = (
        jax.ShapeDtypeStruct((S, B, D), jnp.float32),    # hidden states
        jax.ShapeDtypeStruct((S, B, Fp), jnp.float32),   # lane-padded alphas
    )
    out_specs = (
        pl.BlockSpec((S, B, D), lambda s: (0, 0, 0)),
        pl.BlockSpec((S, B, Fp), lambda s: (0, 0, 0)),
    )

    h_all, alpha_pad = pl.pallas_call(
        _decoder_step_kernel,
        out_shape=out_shape,
        grid_spec=pltpu.PrefetchScalarGridSpec(
            num_scalar_prefetch=0,
            grid=(S,),
            in_specs=in_specs,
            out_specs=out_specs,
            scratch_shapes=[
                pltpu.VMEM((B, D), jnp.float32),   # h
                pltpu.VMEM((B, D), jnp.float32),   # c
            ],
        ),
        compiler_params=pltpu.CompilerParams(
            dimension_semantics=("arbitrary",)),   # sequential recurrence over S
    )(*inputs)

    # fc(dropout(h)) as ONE batched matmul outside the recurrence
    # (XLA tiles fc_w itself, so a large vocab never has to sit resident in VMEM).
    preds = (h_all.reshape(S * B, D) @ params["fc_w"].T
             + params["fc_b"]).reshape(S, B, V)

    predictions = jnp.transpose(preds, (1, 0, 2))            # (B, S, V)
    alphas = jnp.transpose(alpha_pad[:, :, :F], (1, 0, 2))   # (B, S, F)
    return predictions, alphas


def decoder_rnn_reference(params, features, captions):
    """Pure-JAX f32 reference mirroring the PyTorch forward (dropout = identity)."""
    S = captions.shape[1] - 1
    emb_all = params["embedding"][captions]
    mean_f = features.mean(axis=1)
    h = mean_f @ params["init_h_w"].T + params["init_h_b"]
    c = mean_f @ params["init_c_w"].T + params["init_c_b"]
    preds, alphas = [], []
    for s in range(S):
        u_hs = features @ params["U_w"].T + params["U_b"]
        w_ah = h @ params["W_w"].T + params["W_b"]
        comb = jnp.tanh(u_hs + w_ah[:, None, :])
        scores = (comb @ params["A_w"].T + params["A_b"])[..., 0]
        alpha = jax.nn.softmax(scores, axis=1)
        context = (features * alpha[:, :, None]).sum(axis=1)
        x = jnp.concatenate([emb_all[:, s], context], axis=1)
        gates = (x @ params["w_ih"].T + params["b_ih"]
                 + h @ params["w_hh"].T + params["b_hh"])
        i_g, f_g, g_g, o_g = jnp.split(gates, 4, axis=1)
        c = jax.nn.sigmoid(f_g) * c + jax.nn.sigmoid(i_g) * jnp.tanh(g_g)
        h = jax.nn.sigmoid(o_g) * jnp.tanh(c)
        preds.append(h @ params["fc_w"].T + params["fc_b"])
        alphas.append(alpha)
    return jnp.stack(preds, axis=1), jnp.stack(alphas, axis=1)


def init_params(key, embed_size, vocab_size, attention_dim, encoder_dim, decoder_dim):
    keys = jax.random.split(key, 16)

    def u(k, shape, scale=0.1):
        return jax.random.uniform(k, shape, jnp.float32, -scale, scale)

    return dict(
        embedding=u(keys[0], (vocab_size, embed_size)),
        U_w=u(keys[1], (attention_dim, encoder_dim)),
        U_b=u(keys[2], (attention_dim,)),
        W_w=u(keys[3], (attention_dim, decoder_dim)),
        W_b=u(keys[4], (attention_dim,)),
        A_w=u(keys[5], (1, attention_dim)),
        A_b=u(keys[6], (1,)),
        init_h_w=u(keys[7], (decoder_dim, encoder_dim)),
        init_h_b=u(keys[8], (decoder_dim,)),
        init_c_w=u(keys[9], (decoder_dim, encoder_dim)),
        init_c_b=u(keys[10], (decoder_dim,)),
        w_ih=u(keys[11], (4 * decoder_dim, embed_size + encoder_dim)),
        w_hh=u(keys[12], (4 * decoder_dim, decoder_dim)),
        b_ih=u(keys[13], (4 * decoder_dim,)),
        b_hh=u(keys[14], (4 * decoder_dim,)),
        fc_w=u(keys[15], (vocab_size, decoder_dim)),
        fc_b=jnp.zeros((vocab_size,), jnp.float32),
    )


if __name__ == "__main__":
    # Small, shape-consistent config:
    #   features: (batch=2, num_features=16, encoder_dim=32)
    #   captions: (batch=2, seq=9)  -> seq_length = 8 decode steps
    B, NF, ENC, DEC, ATT, EMB, VOCAB, SEQ = 2, 16, 32, 32, 32, 32, 128, 9

    key = jax.random.PRNGKey(0)
    pk, fk, ck = jax.random.split(key, 3)
    params = init_params(pk, EMB, VOCAB, ATT, ENC, DEC)
    features = jax.random.normal(fk, (B, NF, ENC), jnp.float32)
    captions = jax.random.randint(ck, (B, SEQ), 0, VOCAB)

    fwd = jax.jit(functools.partial(decoder_rnn_forward, params))
    preds, alphas = fwd(features, captions)
    preds, alphas = jax.block_until_ready((preds, alphas))

    assert preds.shape == (B, SEQ - 1, VOCAB)
    assert alphas.shape == (B, SEQ - 1, NF)

    ref_p, ref_a = decoder_rnn_reference(params, features, captions)
    # bf16 MXU operands (f32 accumulate) vs pure-f32 reference -> loose tolerance.
    assert float(jnp.max(jnp.abs(preds - ref_p))) < 5e-2
    assert float(jnp.max(jnp.abs(alphas - ref_a))) < 1e-2

    print("KERNEL_OK")
</pallas_src>

<mosaic_0001>
module attributes {stable_mosaic.version = 11 : i64} {
  func.func @_decoder_step_kernel(%arg0: i32, %arg1: memref<2x16x32xf32, #tpu.memory_space<vmem>>, %arg2: memref<2x16x32xbf16, #tpu.memory_space<vmem>>, %arg3: memref<8x2x128xf32, #tpu.memory_space<vmem>>, %arg4: memref<32x32xbf16, #tpu.memory_space<vmem>>, %arg5: memref<1x32xf32, #tpu.memory_space<vmem>>, %arg6: memref<1x32xf32, #tpu.memory_space<vmem>>, %arg7: memref<1x1xf32, #tpu.memory_space<vmem>>, %arg8: memref<64x128xbf16, #tpu.memory_space<vmem>>, %arg9: memref<2x32xf32, #tpu.memory_space<vmem>>, %arg10: memref<2x32xf32, #tpu.memory_space<vmem>>, %arg11: memref<8x2x32xf32, #tpu.memory_space<vmem>>, %arg12: memref<8x2x128xf32, #tpu.memory_space<vmem>>, %arg13: memref<2x32xf32, #tpu.memory_space<vmem>>, %arg14: memref<2x32xf32, #tpu.memory_space<vmem>>) attributes {dimension_semantics = [#tpu.dimension_semantics<arbitrary>], iteration_bounds = array<i64: 8>, scalar_prefetch = 0 : i64, scratch_operands = 2 : i64, tpu.core_type = #tpu.core_type<tc>, window_params = [{pipeline_mode = #tpu.pipeline_mode<synchronous>, transform_indices = @transform_0, window_bounds = array<i64: 2, 16, 32>}, {pipeline_mode = #tpu.pipeline_mode<synchronous>, transform_indices = @transform_1, window_bounds = array<i64: 2, 16, 32>}, {pipeline_mode = #tpu.pipeline_mode<synchronous>, transform_indices = @transform_2, window_bounds = array<i64: 8, 2, 128>}, {pipeline_mode = #tpu.pipeline_mode<synchronous>, transform_indices = @transform_3, window_bounds = array<i64: 32, 32>}, {pipeline_mode = #tpu.pipeline_mode<synchronous>, transform_indices = @transform_4, window_bounds = array<i64: 1, 32>}, {pipeline_mode = #tpu.pipeline_mode<synchronous>, transform_indices = @transform_5, window_bounds = array<i64: 1, 32>}, {pipeline_mode = #tpu.pipeline_mode<synchronous>, transform_indices = @transform_6, window_bounds = array<i64: 1, 1>}, {pipeline_mode = #tpu.pipeline_mode<synchronous>, transform_indices = @transform_7, window_bounds = array<i64: 64, 128>}, {pipeline_mode = #tpu.pipeline_mode<synchronous>, transform_indices = @transform_8, window_bounds = array<i64: 2, 32>}, {pipeline_mode = #tpu.pipeline_mode<synchronous>, transform_indices = @transform_9, window_bounds = array<i64: 2, 32>}, {pipeline_mode = #tpu.pipeline_mode<synchronous>, transform_indices = @transform_10, window_bounds = array<i64: 8, 2, 32>}, {pipeline_mode = #tpu.pipeline_mode<synchronous>, transform_indices = @transform_11, window_bounds = array<i64: 8, 2, 128>}]} {
    %c0_i32 = arith.constant 0 : i32
    %0 = arith.cmpi eq, %arg0, %c0_i32 : i32
    %1 = arith.extui %0 : i1 to i32
    %c0_i32_0 = arith.constant 0 : i32
    %2 = arith.cmpi ne, %1, %c0_i32_0 : i32
    scf.if %2 {
      %c0_39 = arith.constant 0 : index
      %c0_40 = arith.constant 0 : index
      %84 = vector.load %arg9[%c0_39, %c0_40] : memref<2x32xf32, #tpu.memory_space<vmem>>, vector<2x32xf32>
      %c0_41 = arith.constant 0 : index
      %c0_42 = arith.constant 0 : index
      %85 = vector.load %arg13[%c0_41, %c0_42] : memref<2x32xf32, #tpu.memory_space<vmem>>, vector<2x32xf32>
      tpu.vector_store %arg13[%c0_41, %c0_42], %84 {strides = array<i32>} : memref<2x32xf32, #tpu.memory_space<vmem>>, vector<2x32xf32>,
      %c0_43 = arith.constant 0 : index
      %c0_44 = arith.constant 0 : index
      %86 = vector.load %arg10[%c0_43, %c0_44] : memref<2x32xf32, #tpu.memory_space<vmem>>, vector<2x32xf32>
      %c0_45 = arith.constant 0 : index
      %c0_46 = arith.constant 0 : index
      %87 = vector.load %arg14[%c0_45, %c0_46] : memref<2x32xf32, #tpu.memory_space<vmem>>, vector<2x32xf32>
      tpu.vector_store %arg14[%c0_45, %c0_46], %86 {strides = array<i32>} : memref<2x32xf32, #tpu.memory_space<vmem>>, vector<2x32xf32>,
    } else {
    }
    %c0 = arith.constant 0 : index
    %c0_1 = arith.constant 0 : index
    %3 = vector.load %arg13[%c0, %c0_1] : memref<2x32xf32, #tpu.memory_space<vmem>>, vector<2x32xf32>
    %c0_2 = arith.constant 0 : index
    %c0_3 = arith.constant 0 : index
    %4 = vector.load %arg14[%c0_2, %c0_3] : memref<2x32xf32, #tpu.memory_space<vmem>>, vector<2x32xf32>
    %5 = arith.truncf %3 : vector<2x32xf32> to vector<2x32xbf16>
    %c0_4 = arith.constant 0 : index
    %c0_5 = arith.constant 0 : index
    %6 = vector.load %arg4[%c0_4, %c0_5] : memref<32x32xbf16, #tpu.memory_space<vmem>>, vector<32x32xbf16>
    %cst = arith.constant dense<0.000000e+00> : vector<2x32xf32>
    %7 = tpu.matmul %5, %6, %cst {dimension_numbers = #tpu.dot_dimension_numbers<[1], [0], [0], [1], [0, 0, 1, 1], [], []>} : vector<2x32xbf16>, vector<32x32xbf16>, vector<2x32xf32> -> vector<2x32xf32>
    %c0_6 = arith.constant 0 : index
    %c0_7 = arith.constant 0 : index
    %8 = vector.load %arg5[%c0_6, %c0_7] : memref<1x32xf32, #tpu.memory_space<vmem>>, vector<1x32xf32>
    %9 = vector.broadcast %8 : vector<1x32xf32> to vector<2x32xf32>
    %10 = arith.addf %7, %9 : vector<2x32xf32>
    %c0_8 = arith.constant 0 : index
    %c0_9 = arith.constant 0 : index
    %c0_10 = arith.constant 0 : index
    %11 = vector.load %arg1[%c0_8, %c0_9, %c0_10] : memref<2x16x32xf32, #tpu.memory_space<vmem>>, vector<2x16x32xf32>
    %12 = vector.shape_cast %10 : vector<2x32xf32> to vector<2x1x32xf32>
    %13 = vector.broadcast %12 : vector<2x1x32xf32> to vector<2x16x32xf32>
    %14 = arith.addf %11, %13 : vector<2x16x32xf32>
    %15 = math.tanh %14 : vector<2x16x32xf32>
    %c0_11 = arith.constant 0 : index
    %c0_12 = arith.constant 0 : index
    %16 = vector.load %arg6[%c0_11, %c0_12] : memref<1x32xf32, #tpu.memory_space<vmem>>, vector<1x32xf32>
    %17 = vector.shape_cast %16 : vector<1x32xf32> to vector<1x1x32xf32>
    %18 = vector.broadcast %17 : vector<1x1x32xf32> to vector<2x16x32xf32>
    %19 = arith.mulf %15, %18 : vector<2x16x32xf32>
    %cst_13 = arith.constant dense<0.000000e+00> : vector<2x16xf32>
    %20 = vector.multi_reduction <add>, %19, %cst_13 [2] : vector<2x16x32xf32> to vector<2x16xf32>
    %c0_14 = arith.constant 0 : index
    %c0_15 = arith.constant 0 : index
    %21 = vector.load %arg7[%c0_14, %c0_15] : memref<1x1xf32, #tpu.memory_space<vmem>>, vector<1x1xf32>
    %22 = vector.broadcast %21 : vector<1x1xf32> to vector<2x16xf32>
    %23 = arith.addf %20, %22 : vector<2x16xf32>
    %cst_16 = arith.constant dense<0xFF800000> : vector<2xf32>
    %24 = vector.multi_reduction <maximumf>, %23, %cst_16 [1] : vector<2x16xf32> to vector<2xf32>
    %25 = vector.shape_cast %24 : vector<2xf32> to vector<2x1xf32>
    %26 = vector.broadcast %25 : vector<2x1xf32> to vector<2x16xf32>
    %27 = arith.subf %23, %26 : vector<2x16xf32>
    %28 = math.exp %27 : vector<2x16xf32>
    %cst_17 = arith.constant dense<0.000000e+00> : vector<2xf32>
    %29 = vector.multi_reduction <add>, %28, %cst_17 [1] : vector<2x16xf32> to vector<2xf32>
    %30 = vector.shape_cast %29 : vector<2xf32> to vector<2x1xf32>
    %31 = tpu.reciprocal %30 {approx = true} : vector<2x1xf32> -> vector<2x1xf32>
    %32 = vector.broadcast %31 : vector<2x1xf32> to vector<2x16xf32>
    %33 = arith.mulf %28, %32 : vector<2x16xf32>
    %34 = vector.shape_cast %33 : vector<2x16xf32> to vector<2x1x16xf32>
    %35 = arith.truncf %34 : vector<2x1x16xf32> to vector<2x1x16xbf16>
    %c0_18 = arith.constant 0 : index
    %c0_19 = arith.constant 0 : index
    %c0_20 = arith.constant 0 : index
    %36 = vector.load %arg2[%c0_18, %c0_19, %c0_20] : memref<2x16x32xbf16, #tpu.memory_space<vmem>>, vector<2x16x32xbf16>
    "tpu.trace_start"() <{level = 10 : i32, message = "bqf,bfe->bqe"}> : () -> ()
    %cst_21 = arith.constant dense<0.000000e+00> : vector<2x1x32xf32>
    %37 = tpu.matmul %35, %36, %cst_21 {dimension_numbers = #tpu.dot_dimension_numbers<[2], [1], [1], [2], [0, 0, 0, 1, 1, 2], [0], [0]>} : vector<2x1x16xbf16>, vector<2x16x32xbf16>, vector<2x1x32xf32> -> vector<2x1x32xf32>
    "tpu.trace_stop"() : () -> ()
    %38 = vector.shape_cast %37 : vector<2x1x32xf32> to vector<2x32xf32>
    %39 = tpu.concatenate %38, %3 in 1 : vector<2x32xf32>, vector<2x32xf32> -> vector<2x64xf32>
    %40 = arith.truncf %39 : vector<2x64xf32> to vector<2x64xbf16>
    %41 = arith.index_cast %arg0 : i32 to index
    %c0_22 = arith.constant 0 : index
    %c0_23 = arith.constant 0 : index
    %42 = vector.load %arg3[%41, %c0_22, %c0_23] : memref<8x2x128xf32, #tpu.memory_space<vmem>>, vector<1x2x128xf32>
    %43 = vector.shape_cast %42 : vector<1x2x128xf32> to vector<2x128xf32>
    %c0_24 = arith.constant 0 : index
    %c0_25 = arith.constant 0 : index
    %44 = vector.load %arg8[%c0_24, %c0_25] : memref<64x128xbf16, #tpu.memory_space<vmem>>, vector<64x128xbf16>
    %cst_26 = arith.constant dense<0.000000e+00> : vector<2x128xf32>
    %45 = tpu.matmul %40, %44, %cst_26 {dimension_numbers = #tpu.dot_dimension_numbers<[1], [0], [0], [1], [0, 0, 1, 1], [], []>} : vector<2x64xbf16>, vector<64x128xbf16>, vector<2x128xf32> -> vector<2x128xf32>
    %46 = arith.addf %43, %45 : vector<2x128xf32>
    %47 = vector.extract_strided_slice %46 {offsets = [0, 0], sizes = [2, 32], strides = [1, 1]} : vector<2x128xf32> to vector<2x32xf32>
    %48 = arith.negf %47 : vector<2x32xf32>
    %49 = math.exp %48 : vector<2x32xf32>
    %cst_27 = arith.constant 1.000000e+00 : f32
    %50 = vector.broadcast %cst_27 : f32 to vector<2x32xf32>
    %51 = arith.addf %50, %49 : vector<2x32xf32>
    %52 = arith.divf %50, %51 : vector<2x32xf32>
    %53 = vector.extract_strided_slice %46 {offsets = [0, 32], sizes = [2, 32], strides = [1, 1]} : vector<2x128xf32> to vector<2x32xf32>
    %54 = arith.negf %53 : vector<2x32xf32>
    %55 = math.exp %54 : vector<2x32xf32>
    %cst_28 = arith.constant 1.000000e+00 : f32
    %56 = vector.broadcast %cst_28 : f32 to vector<2x32xf32>
    %57 = arith.addf %56, %55 : vector<2x32xf32>
    %58 = arith.divf %56, %57 : vector<2x32xf32>
    %59 = vector.extract_strided_slice %46 {offsets = [0, 64], sizes = [2, 32], strides = [1, 1]} : vector<2x128xf32> to vector<2x32xf32>
    %60 = math.tanh %59 : vector<2x32xf32>
    %61 = vector.extract_strided_slice %46 {offsets = [0, 96], sizes = [2, 32], strides = [1, 1]} : vector<2x128xf32> to vector<2x32xf32>
    %62 = arith.negf %61 : vector<2x32xf32>
    %63 = math.exp %62 : vector<2x32xf32>
    %cst_29 = arith.constant 1.000000e+00 : f32
    %64 = vector.broadcast %cst_29 : f32 to vector<2x32xf32>
    %65 = arith.addf %64, %63 : vector<2x32xf32>
    %66 = arith.divf %64, %65 : vector<2x32xf32>
    %67 = arith.mulf %58, %4 : vector<2x32xf32>
    %68 = arith.mulf %52, %60 : vector<2x32xf32>
    %69 = arith.addf %67, %68 : vector<2x32xf32>
    %70 = math.tanh %69 : vector<2x32xf32>
    %71 = arith.mulf %66, %70 : vector<2x32xf32>
    %72 = arith.index_cast %arg0 : i32 to index
    %c0_30 = arith.constant 0 : index
    %c0_31 = arith.constant 0 : index
    %73 = vector.load %arg11[%72, %c0_30, %c0_31] : memref<8x2x32xf32, #tpu.memory_space<vmem>>, vector<1x2x32xf32>
    %74 = vector.shape_cast %73 : vector<1x2x32xf32> to vector<2x32xf32>
    %75 = vector.shape_cast %71 : vector<2x32xf32> to vector<1x2x32xf32>
    tpu.vector_store %arg11[%72, %c0_30, %c0_31], %75 {strides = array<i32>} : memref<8x2x32xf32, #tpu.memory_space<vmem>>, vector<1x2x32xf32>,
    %cst_32 = arith.constant 0.000000e+00 : f32
    %76 = vector.broadcast %cst_32 : f32 to vector<2x112xf32>
    %77 = tpu.concatenate %33, %76 in 1 : vector<2x16xf32>, vector<2x112xf32> -> vector<2x128xf32>
    %78 = arith.index_cast %arg0 : i32 to index
    %c0_33 = arith.constant 0 : index
    %c0_34 = arith.constant 0 : index
    %79 = vector.load %arg12[%78, %c0_33, %c0_34] : memref<8x2x128xf32, #tpu.memory_space<vmem>>, vector<1x2x128xf32>
    %80 = vector.shape_cast %79 : vector<1x2x128xf32> to vector<2x128xf32>
    %81 = vector.shape_cast %77 : vector<2x128xf32> to vector<1x2x128xf32>
    tpu.vector_store %arg12[%78, %c0_33, %c0_34], %81 {strides = array<i32>} : memref<8x2x128xf32, #tpu.memory_space<vmem>>, vector<1x2x128xf32>,
    %c0_35 = arith.constant 0 : index
    %c0_36 = arith.constant 0 : index
    %82 = vector.load %arg13[%c0_35, %c0_36] : memref<2x32xf32, #tpu.memory_space<vmem>>, vector<2x32xf32>
    tpu.vector_store %arg13[%c0_35, %c0_36], %71 {strides = array<i32>} : memref<2x32xf32, #tpu.memory_space<vmem>>, vector<2x32xf32>,
    %c0_37 = arith.constant 0 : index
    %c0_38 = arith.constant 0 : index
    %83 = vector.load %arg14[%c0_37, %c0_38] : memref<2x32xf32, #tpu.memory_space<vmem>>, vector<2x32xf32>
    tpu.vector_store %arg14[%c0_37, %c0_38], %69 {strides = array<i32>} : memref<2x32xf32, #tpu.memory_space<vmem>>, vector<2x32xf32>,
    return
  }
  func.func @transform_0(%arg0: i32) -> (i32, i32, i32) {
    %c0_i32 = arith.constant 0 : i32
    %c0_i32_0 = arith.constant 0 : i32
    %c0_i32_1 = arith.constant 0 : i32
    %c0_i32_2 = arith.constant 0 : i32
    return %c0_i32, %c0_i32_0, %c0_i32_1 : i32, i32, i32
  }
  func.func @transform_1(%arg0: i32) -> (i32, i32, i32) {
    %c0_i32 = arith.constant 0 : i32
    %c0_i32_0 = arith.constant 0 : i32
    %c0_i32_1 = arith.constant 0 : i32
    %c0_i32_2 = arith.constant 0 : i32
    return %c0_i32, %c0_i32_0, %c0_i32_1 : i32, i32, i32
  }
  func.func @transform_2(%arg0: i32) -> (i32, i32, i32) {
    %c0_i32 = arith.constant 0 : i32
    %c0_i32_0 = arith.constant 0 : i32
    %c0_i32_1 = arith.constant 0 : i32
    %c0_i32_2 = arith.constant 0 : i32
    return %c0_i32, %c0_i32_0, %c0_i32_1 : i32, i32, i32
  }
  func.func @transform_3(%arg0: i32) -> (i32, i32) {
    %c0_i32 = arith.constant 0 : i32
    %c0_i32_0 = arith.constant 0 : i32
    %c0_i32_1 = arith.constant 0 : i32
    return %c0_i32, %c0_i32_0 : i32, i32
  }
  func.func @transform_4(%arg0: i32) -> (i32, i32) {
    %c0_i32 = arith.constant 0 : i32
    %c0_i32_0 = arith.constant 0 : i32
    %c0_i32_1 = arith.constant 0 : i32
    return %c0_i32, %c0_i32_0 : i32, i32
  }
  func.func @transform_5(%arg0: i32) -> (i32, i32) {
    %c0_i32 = arith.constant 0 : i32
    %c0_i32_0 = arith.constant 0 : i32
    %c0_i32_1 = arith.constant 0 : i32
    return %c0_i32, %c0_i32_0 : i32, i32
  }
  func.func @transform_6(%arg0: i32) -> (i32, i32) {
    %c0_i32 = arith.constant 0 : i32
    %c0_i32_0 = arith.constant 0 : i32
    %c0_i32_1 = arith.constant 0 : i32
    return %c0_i32, %c0_i32_0 : i32, i32
  }
  func.func @transform_7(%arg0: i32) -> (i32, i32) {
    %c0_i32 = arith.constant 0 : i32
    %c0_i32_0 = arith.constant 0 : i32
    %c0_i32_1 = arith.constant 0 : i32
    return %c0_i32, %c0_i32_0 : i32, i32
  }
  func.func @transform_8(%arg0: i32) -> (i32, i32) {
    %c0_i32 = arith.constant 0 : i32
    %c0_i32_0 = arith.constant 0 : i32
    %c0_i32_1 = arith.constant 0 : i32
    return %c0_i32, %c0_i32_0 : i32, i32
  }
  func.func @transform_9(%arg0: i32) -> (i32, i32) {
    %c0_i32 = arith.constant 0 : i32
    %c0_i32_0 = arith.constant 0 : i32
    %c0_i32_1 = arith.constant 0 : i32
    return %c0_i32, %c0_i32_0 : i32, i32
  }
  func.func @transform_10(%arg0: i32) -> (i32, i32, i32) {
    %c0_i32 = arith.constant 0 : i32
    %c0_i32_0 = arith.constant 0 : i32
    %c0_i32_1 = arith.constant 0 : i32
    %c0_i32_2 = arith.constant 0 : i32
    return %c0_i32, %c0_i32_0, %c0_i32_1 : i32, i32, i32
  }
  func.func @transform_11(%arg0: i32) -> (i32, i32, i32) {
    %c0_i32 = arith.constant 0 : i32
    %c0_i32_0 = arith.constant 0 : i32
    %c0_i32_1 = arith.constant 0 : i32
    %c0_i32_2 = arith.constant 0 : i32
    return %c0_i32, %c0_i32_0, %c0_i32_1 : i32, i32, i32
  }
}

</mosaic_0001>

<bundles_post_ra>
// kernel: decoder_rnn_forward.1
= control target key start
LH: loop header
LB: loop body
LE: loop exit
PB: predicated region body
PF: predicated region fallthrough
CT: control target
= control target key end

     0   :  { %s1163_s19 = smov 0   ;;  %s1340_s0 = inlined_call_operand.vmem [shape: f32[2,16,32], index: 0, kind: input, shape index: {}]   ;;  %s1341_s1 = inlined_call_operand.vmem [shape: bf16[2,16,32], index: 1, kind: input, shape index: {}]   ;;  %s1342_s2 = inlined_call_operand.vmem [shape: f32[8,2,128], index: 2, kind: input, shape index: {}]   ;;  %s1343_s3 = inlined_call_operand.vmem [shape: bf16[32,32], index: 3, kind: input, shape index: {}]   ;;  %s1344_s4 = inlined_call_operand.vmem [shape: f32[1,32], index: 4, kind: input, shape index: {}]   ;;  %s1345_s5 = inlined_call_operand.vmem [shape: f32[1,32], index: 5, kind: input, shape index: {}]   ;;  %s1346_s6 = inlined_call_operand.<no memory space> [shape: f32[1,1], index: 6, kind: input, shape index: {}]   ;;  %s1347_s7 = inlined_call_operand.vmem [shape: bf16[64,128], index: 7, kind: input, shape index: {}]   ;;  %s1348_s8 = inlined_call_operand.vmem [shape: f32[2,32], index: 8, kind: input, shape index: {}]   ;;  %s1349_s9 = inlined_call_operand.vmem [shape: f32[2,32], index: 9, kind: input, shape index: {}]   ;;  %s1350_s10 = inlined_call_operand.vmem [shape: f32[8,2,32], index: 10, kind: output, shape index: {0}]   ;;  %s1351_s11 = inlined_call_operand.vmem [shape: f32[8,2,128], index: 11, kind: output, shape index: {1}]  }
   0x1   :  { %v17_v0 = vstv %s1346_s6 }
   0x2   :  { %18 = vst [vmem:[#allocation4] sm:$0x1] %v17_v0 }
   0x3 LB: > { %s967_s20 = sadd.s32 4294967295, %s1091_s19   ;;  %p969_p0 = scmp.ge.s32.totalorder %s1091_s19, 1  ;;  %s1091_s19 = sphi %s1163_s19, %s24_s19  }
   0x4   : > { %p322_p1 = scmp.lt.s32.totalorder %s1091_s19, 9 }
   0x6   : > { %p323_p2 = pnand %p969_p0, %p322_p1 }
   0x7   : > { %p970_p3 = scmp.ne.s32.totalorder (!%p323_p2), %s967_s20, 0 }
   0x8   : > { %326 = sbr.rel (%p323_p2) target bundleno = 1959 (0x7a7), region = 60 }
   0xf   : > { %356 = sbr.rel (%p970_p3) target bundleno = 22 (0x16), region = 64  ;;  %v357_v1 = vld [vmem:[%s1348_s8] sm:$0x3] (!%p970_p3)  ;;  %vm358_vm0 = vcmask (!%p970_p3), 254976  }
  0x10   : > { %v360_v2 = vld [vmem:[%s1349_s9] sm:$0x3] (!%p970_p3)  ;;  %359 = vst.msk [vmem:[#allocation2] sm:$0x3] (!%p970_p3), %vm358_vm0, %v357_v1 }
  0x11   : > { %361 = vst.msk [vmem:[#allocation3] sm:$0x3] (!%p970_p3), %vm358_vm0, %v360_v2 }
  0x16 PF: > { %v1051_v3 = vld [vmem:[%s1343_s3] sm:$0xff]   ;;  %v1093_v4 = vmov 0.0   ;;  %v1052_v5 = vld [vmem:[%s1343_s3 + $0x8] sm:$0xff]   ;;  %vm1094_vm1 = vmmov 0   ;;  %vm388_vm2 = vcmask 261120   ;;  %v1095_v8 = vmov 0  }
  0x17   : > { %1002 = vmatprep.subr.bf16.mxu0 %v1093_v4  ;;  %1010 = vmatprep.subr.bf16.mxu1 %v1093_v4  ;;  %v1189_v6 = vld [vmem:[#allocation2] sm:$0x3]  ;;  %v1096_v9 = vmov 1966171168   ;;  %v440_v11 = vlaneseq  ;;  %v433_v26 = vld [vmem:[%s1340_s0 + $0x8] sm:$0xff]  ;;  %v434_v29 = vld [vmem:[%s1340_s0 + $0x10] sm:$0xff] }
  0x18   : > { %1003 = vmatpush3.bf16.msra.mxu0 %v1051_v3  ;;  %1006 = vmatprep.mubr.msk.bf16.mxu0 %vm1094_vm1, %v1093_v4  ;;  %v364_v7 = vpack.c.bf16 %v1189_v6, %v1189_v6  ;;  %v438_v10 = vunpack.c.l.s4 %v1096_v9  ;;  %v971_v14 = vld [vmem:[%s1344_s4] ss:$0 sm:$0xff]  ;;  %v435_v30 = vld [vmem:[%s1340_s0 + $0x18] sm:$0xff]  ;;  %v976_v49 = vld [vmem:[#allocation4] ss:$0 sm:$0xff]  ;;  %vm529_vm3 = vcmask 130112  }
  0x19   : > { %1004 = vmatprep.subr.bf16.mxu0 %v1093_v4  ;;  %1012 = vmatprep.mubr.msk.bf16.mxu1 %vm1094_vm1, %v1093_v4  ;;  %v1200_v13 = vshrl.u32 %v440_v11, 7  ;;  %v432_v25 = vld [vmem:[%s1340_s0] sm:$0xff]  ;;  %v519_v51 = vand.u32 127, %v440_v11  ;;  %vm540_vm4 = vcmask 1041409   ;;  %vm543_vm5 = vcmask 123904   ;;  %s1097_s24 = smov 32  }
  0x1a   : > { %1049 = vset.pattern.permute.xlu0 %v1095_v8  ;;  %1050 = vset.pattern.permute.xlu1 %v1095_v8  ;;  %v439_v12 = vunpack.c.0.s8 %v438_v10  ;;  %v975_v36 = vld [vmem:[%s1345_s5] ss:$0 sm:$0xff]  ;;  %vm656_vm6 = vcmask 130048   ;;  %vm814_vm7 = vcmask 523264   ;;  %s1305_s16 = sshll.u32 %s967_s20, 1  ;;  %s1098_s21 = smov 64  }
  0x1b   : > { %v1207_v21 = vsub.s32 0, %v1200_v13  ;;  %v524_v53 = vadd.s32 4294967288, %v519_v51  ;;  %v1231_v55 = vsub.s32 %v519_v51, %v1200_v13  ;;  %v554_v9 = vsub.s32 1, %v1200_v13  ;;  %s780_s6 = scalar_lea.vmem %s1342_s2, %s1305_s16  ;;  %s1099_s20 = smov 96  }
  0x1c   : > { %1005 = vmatpush3.bf16.msra.mxu0 %v1052_v5  ;;  %v442_v15 = vsub.s32 %v439_v12, %v1200_v13  ;;  %vm892_vm8 = vcmask 254976   ;;  %s931_s25 = scalar_lea.vmem %s1351_s11, %s1305_s16  ;;  %s891_s27 = scalar_lea.vmem %s1350_s10, %s1305_s16 }
  0x1d   : > { %1022 = vmatprep.subr.bf16.mxu0 %v1093_v4  ;;  %v1234_v56 = vsub.s32 %v524_v53, %v1200_v13 }
  0x1f   : > { %1007 = vmatmul.mubr.msk.bf16.vlgmr.msra.gmra.mrb[0].mxu0 %vm388_vm2, %v364_v7 }
  0x20   : > { %1030 = vmatprep.mubr.msk.bf16.mxu0 %vm1094_vm1, %v1093_v4 }
  0xf2   : > { %v426_v16 = vpop.f32.mrb[0].mxu0 }
  0xf3   : > { %v427_v17 = vadd.f32 %v971_v14, %v426_v16  ;;  %v1008_v18 = vpop.f32.mrb[1].mxu0 }
  0xf4   : > { %v429_v19 = vpop.f32.mrb[2].mxu0 }
  0xf5   : > { %v443_v20 = vrot.slane %v427_v17, %v442_v15  ;;  %v1009_v22 = vpop.f32.mrb[3].mxu0 }
  0xf7   : > { %v444_v23 = vcombine.high %v443_v20, %v443_v20  ;;  %v451_v24 = vrot.slane %v443_v20, %v442_v15 }
  0xf9   : > { %v458_v27 = vrot.slane %v444_v23, %v442_v15  ;;  %v462_v28 = vrot.slane %v451_v24, %v1207_v21 }
  0xfb   : > { %v466_v31 = vrot.slane %v458_v27, %v1207_v21  ;;  %v469_v32 = vadd.f32 %v462_v28, %v432_v25  ;;  %v470_v33 = vadd.f32 %v462_v28, %v433_v26 }
  0xfd   : > { %v471_v34 = vadd.f32 %v466_v31, %v434_v29  ;;  %v472_v35 = vadd.f32 %v466_v31, %v435_v30  ;;  %1059 = vtanh.f32 %v469_v32 }
  0xfe   : > { %1061 = vtanh.f32 %v470_v33 }
  0xff   : > { %1063 = vtanh.f32 %v471_v34 }
 0x100   : > { %1065 = vtanh.f32 %v472_v35 }
 0x107   : > { %v1060_v37 = vpop.eup %1059 }
 0x108   : > { %v1062_v38 = vpop.eup %1061  ;;  %v484_v39 = vmul.f32 %v1060_v37, %v975_v36 }
 0x109   : > { %v1064_v40 = vpop.eup %1063  ;;  %v485_v44 = vmul.f32 %v1062_v38, %v975_v36 }
 0x10a   : > { %v1066_v41 = vpop.eup %1065  ;;  %v488_v42 = vsel %vm388_vm2, %v484_v39, 0.0  ;;  %v486_v43 = vmul.f32 %v1064_v40, %v975_v36 }
 0x10b   : > { %489 = vadd.xlane.f32.xlu0 %v488_v42  ;;  %v487_v46 = vmul.f32 %v1066_v41, %v975_v36  ;;  %v491_v47 = vsel %vm388_vm2, %v485_v44, 0.0 }
 0x10c   : > { %v494_v45 = vsel %vm388_vm2, %v486_v43, 0.0 }
 0x10d   : > { %495 = vadd.xlane.f32.xlu1 %v494_v45  ;;  %v497_v48 = vsel %vm388_vm2, %v487_v46, 0.0 }
 0x10f   : > { %492 = vadd.xlane.f32.xlu0 %v491_v47 }
 0x111   : > { %498 = vadd.xlane.f32.xlu1 %v497_v48 }
 0x125   : > { %507 = vperm.xlu0 %1049, %v976_v49  }
 0x198   : > { %v490_v50 = vpop.xlane.xlu0 %489 }
 0x19a   : > { %v496_v52 = vpop.xlane.xlu1 %495 }
 0x19c   : > { %v493_v54 = vpop.xlane.xlu0 %492 }
 0x19e   : > { %v499_v57 = vpop.xlane.xlu1 %498 }
 0x1a4   : > { %v508_v58 = vpop.permute.xlu0 %507 }
 0x1a5   : > { %v510_v59 = vadd.f32 %v508_v58, %v490_v50  ;;  %v511_v60 = vadd.f32 %v508_v58, %v493_v54  ;;  %v512_v61 = vadd.f32 %v508_v58, %v496_v52  ;;  %v513_v62 = vadd.f32 %v508_v58, %v499_v57  ;;  %v1053_v50 = vld [vmem:[%s1341_s1] sm:$0xff]  }
 0x1a6   : > { %1011 = vmatpush3.bf16.msra.mxu1 %v1053_v50 }
 0x1a7   : > { %v523_v63 = vrot.slane %v510_v59, %v1231_v55  ;;  %v528_v0 = vrot.slane %v511_v60, %v1234_v56  ;;  %v534_v1 = vrot.slane %v512_v61, %v1231_v55  ;;  %v538_v2 = vrot.slane %v513_v62, %v1234_v56  ;;  %1016 = vmatprep.subr.bf16.mxu1 %v1093_v4 }
 0x1a9   : > { %v530_v3 = vsel %vm529_vm3, %v528_v0, %v523_v63  ;;  %v539_v5 = vsel %vm529_vm3, %v538_v2, %v534_v1  ;;  %v1055_v2 = vld [vmem:[%s1347_s7] sm:$0xff]  }
 0x1aa   : > { %v541_v7 = vsel %vm540_vm4, %v539_v5, %v530_v3  ;;  %1023 = vmatpush3.bf16.msra.mxu0 %v1055_v2  ;;  %v1056_v3 = vld [vmem:[%s1347_s7 + $0x8] sm:$0xff]   ;;  %v1057_v5 = vld [vmem:[%s1347_s7 + $0x10] sm:$0xff]  }
 0x1ab   : > { %v544_v8 = vsel %vm543_vm5, %v541_v7, -inf  ;;  %1024 = vmatprep.subr.bf16.mxu0 %v1093_v4  ;;  %v1058_v7 = vld [vmem:[%s1347_s7 + $0x18] sm:$0xff]  }
 0x1ac   : > { %545 = vmax.xlane.f32.xlu1 %v544_v8 }
 0x1ae   : > { %1025 = vmatpush3.bf16.msra.mxu0 %v1056_v3 }
 0x1af   : > { %1026 = vmatprep.subr.bf16.mxu0 %v1093_v4 }
 0x1b2   : > { %1027 = vmatpush3.bf16.msra.mxu0 %v1057_v5 }
 0x1b3   : > { %1028 = vmatprep.subr.bf16.mxu0 %v1093_v4 }
 0x1b6   : > { %1029 = vmatpush3.bf16.msra.mxu0 %v1058_v7 }
 0x239   : > { %v546_v10 = vpop.xlane.xlu1 %545 }
 0x23a   : > { %v551_v11 = vrot.slane %v546_v10, %v1207_v21  ;;  %v555_v12 = vrot.slane %v546_v10, %v554_v9 }
 0x23c   : > { %v558_v14 = vsub.f32 %v510_v59, %v551_v11  ;;  %v559_v15 = vsub.f32 %v511_v60, %v551_v11  ;;  %v560_v17 = vsub.f32 %v512_v61, %v555_v12  ;;  %v561_v19 = vsub.f32 %v513_v62, %v555_v12  ;;  %v1054_v59 = vld [vmem:[%s1341_s1 + $0x8] sm:$0xff]  }
 0x23e   : > { %v562_v16 = vmul.f32 1.442695, %v558_v14  ;;  %v564_v18 = vmul.f32 1.442695, %v559_v15  ;;  %v566_v20 = vmul.f32 1.442695, %v560_v17 }
 0x23f   : > { %v568_v22 = vmul.f32 1.442695, %v561_v19 }
 0x240   : > { %1067 = vpow2.f32 %v562_v16 }
 0x241   : > { %1069 = vpow2.f32 %v564_v18 }
 0x242   : > { %1071 = vpow2.f32 %v566_v20 }
 0x243   : > { %1073 = vpow2.f32 %v568_v22  ;;  %v781_v22 = vld [vmem:[%s780_s6] sm:$0x3] }
 0x24a   : > { %v1068_v23 = vpop.eup %1067 }
 0x24b   : > { %575 = vperm.xlu1 %1050, %v1068_v23   ;;  %v1070_v24 = vpop.eup %1069 }
 0x24c   : > { %v1072_v13 = vpop.eup %1071 }
 0x24d   : > { %v1074_v25 = vpop.eup %1073 }
 0x24f   : > { %578 = vperm.xlu1 %1050, %v1070_v24  }
 0x253   : > { %581 = vperm.xlu1 %1050, %v1072_v13  }
 0x257   : > { %584 = vperm.xlu1 %1050, %v1074_v25  }
 0x2ca   : > { %v576_v26 = vpop.permute.xlu1 %575 }
 0x2cb   : > { %v589_v31 = vrot.slane %v576_v26, %v1231_v55 }
 0x2ce   : > { %v579_v27 = vpop.permute.xlu1 %578 }
 0x2cf   : > { %v593_v29 = vrot.slane %v579_v27, %v1234_v56 }
 0x2d1   : > { %v594_v34 = vsel %vm529_vm3, %v593_v29, %v589_v31 }
 0x2d2   : > { %v582_v28 = vpop.permute.xlu1 %581 }
 0x2d3   : > { %v598_v32 = vrot.slane %v582_v28, %v1231_v55  ;;  %v363_v28 = vld [vmem:[#allocation3] sm:$0x3] }
 0x2d6   : > { %v585_v30 = vpop.permute.xlu1 %584 }
 0x2d7   : > { %v602_v33 = vrot.slane %v585_v30, %v1234_v56 }
 0x2d9   : > { %v603_v35 = vsel %vm529_vm3, %v602_v33, %v598_v32 }
 0x2da   : > { %v604_v36 = vsel %vm540_vm4, %v603_v35, %v594_v34 }
 0x2db   : > { %v606_v37 = vsel %vm543_vm5, %v604_v36, 0.0 }
 0x2dc   : > { %607 = vadd.xlane.f32.xlu1 %v606_v37 }
 0x369   : > { %v608_v38 = vpop.xlane.xlu1 %607 }
 0x36a   : > { %1075 = vrcp.f32 %v608_v38 }
 0x374   : > { %v1076_v39 = vpop.eup %1075 }
 0x375   : > { %v614_v40 = vrot.slane %v1076_v39, %v1207_v21  ;;  %v618_v43 = vrot.slane %v1076_v39, %v554_v9 }
 0x377   : > { %v1255_v41 = vmul.f32 %v1068_v23, %v614_v40  ;;  %v1257_v42 = vmul.f32 %v1070_v24, %v614_v40  ;;  %v1261_v46 = vmul.f32 %v1072_v13, %v618_v43  ;;  %v1263_v47 = vmul.f32 %v1074_v25, %v618_v43 }
 0x379   : > { %v625_v44 = vpack.c.bf16 %v1257_v42, %v1255_v41  ;;  %v626_v49 = vpack.c.bf16 %v1263_v47, %v1261_v46 }
 0x37b   : > { %v632_v45 = vunpack.c.l.b16 %v625_v44  ;;  %v633_v48 = vunpack.c.h.b16 %v625_v44  ;;  %v701_v21 = vunpack.c.l.b16 %v626_v49  ;;  %v702_v51 = vunpack.c.h.b16 %v626_v49 }
 0x37d   : > { %635 = vperm.xlu0 %1049, %v632_v45  }
 0x381   : > { %638 = vperm.xlu0 %1049, %v633_v48  }
 0x385   : > { %704 = vperm.xlu0 %1049, %v701_v21  }
 0x389   : > { %707 = vperm.xlu0 %1049, %v702_v51  }
 0x38d   : > { %774 = vrot.lane.b32.xlu0 %v1189_v6, %s1097_s24 }
 0x3fc   : > { %v636_v52 = vpop.permute.xlu0 %635 }
 0x3fd   : > { %v643_v54 = vrot.slane %v636_v52, %v1231_v55 }
 0x400   : > { %v639_v53 = vpop.permute.xlu0 %638 }
 0x401   : > { %v647_v57 = vrot.slane %v639_v53, %v1234_v56 }
 0x403   : > { %v648_v58 = vsel %vm529_vm3, %v647_v57, %v643_v54 }
 0x404   : > { %v649_v60 = vpack.c.b16 %v648_v58, %v648_v58  ;;  %v705_v61 = vpop.permute.xlu0 %704 }
 0x405   : > { %v712_v62 = vrot.slane %v705_v61, %v1231_v55 }
 0x406   : > { %1013 = vmatmul.mubr.msk.bf16.vlgmr.msra.gmra.mrb[0].mxu1 %vm656_vm6, %v649_v60 }
 0x407   : > { %1017 = vmatpush3.bf16.msra.mxu1 %v1054_v59  ;;  %1018 = vmatprep.mubr.msk.bf16.mxu1 %vm1094_vm1, %v1093_v4 }
 0x408   : > { %v708_v6 = vpop.permute.xlu0 %707 }
 0x409   : > { %v716_v63 = vrot.slane %v708_v6, %v1234_v56 }
 0x40b   : > { %v717_v0 = vsel %vm529_vm3, %v716_v63, %v712_v62 }
 0x40c   : > { %v718_v1 = vpack.c.b16 %v717_v0, %v717_v0  ;;  %v775_v16 = vpop.permute.xlu0 %774 }
 0x40e   : > { %1019 = vmatmul.mubr.msk.bf16.vlgmr.msra.gmra.mrb[4].mxu1 %vm656_vm6, %v718_v1 }
 0x4d9   : > { %v694_v8 = vpop.f32.mrb[0].mxu1 }
 0x4da   : > { %v1014_v9 = vpop.f32.mrb[1].mxu1 }
 0x4db   : > { %v697_v10 = vpop.f32.mrb[2].mxu1 }
 0x4dc   : > { %v1015_v11 = vpop.f32.mrb[3].mxu1 }
 0x4e1   : > { %v762_v12 = vpop.f32.mrb[4].mxu1 }
 0x4e2   : > { %v770_v14 = vrot.slane %v762_v12, 7  ;;  %v1020_v15 = vpop.f32.mrb[5].mxu1 }
 0x4e3   : > { %v765_v17 = vpop.f32.mrb[6].mxu1 }
 0x4e4   : > { %v1021_v18 = vpop.f32.mrb[7].mxu1  ;;  %v771_v19 = vsel %vm540_vm4, %v770_v14, %v694_v8 }
 0x4e5   : > { %v777_v4 = vsel %vm388_vm2, %v771_v19, %v775_v16 }
 0x4e6   : > { %v778_v20 = vpack.c.bf16 %v777_v4, %v777_v4 }
 0x4e8   : > { %1031 = vmatmul.mubr.msk.bf16.vlgmr.msra.gmra.mrb[4].mxu0 %vm814_vm7, %v778_v20 }
 0x5bb   : > { %v852_v23 = vpop.f32.mrb[4].mxu0 }
 0x5bc   : > { %v858_v24 = vadd.f32 %v852_v23, %v781_v22  ;;  %v1032_v13 = vpop.f32.mrb[5].mxu0 }
 0x5bd   : > { %v855_v25 = vpop.f32.mrb[6].mxu0 }
 0x5be   : > { %1077 = vtanh.f32 %v858_v24  ;;  %v1033_v26 = vpop.f32.mrb[7].mxu0  ;;  %v987_v29 = vmul.f32 -1.442695, %v858_v24 }
 0x5c0   : > { %1079 = vpow2.f32 %v987_v29 }
 0x5c8   : > { %v1078_v27 = vpop.eup %1077 }
 0x5c9   : > { %872 = vrot.lane.b32.xlu0 %v1078_v27, %s1098_s21 }
 0x5ca   : > { %v1080_v30 = vpop.eup %1079 }
 0x5cb   : > { %v862_v31 = vadd.f32 1.0, %v1080_v30 }
 0x5cd   : > { %867 = vrot.lane.b32.xlu0 %v363_v28, %s1097_s24  ;;  %1081 = vrcp.f32 %v862_v31 }
 0x5d7   : > { %v1082_v32 = vpop.eup %1081 }
 0x63b   : > { %v873_v33 = vpop.permute.xlu0 %872 }
 0x63c   : > { %v875_v34 = vmul.f32 %v1082_v32, %v873_v33 }
 0x63e   : > { %877 = vrot.lane.b32.xlu1 %v875_v34, %s1097_s24 }
 0x63f   : > { %v868_v35 = vpop.permute.xlu0 %867 }
 0x640   : > { %v870_v36 = vmul.f32 %v1082_v32, %v868_v35 }
 0x642   : > { %908 = vperm.xlu1 %1050, %v1263_v47  }
 0x6b0   : > { %v878_v37 = vpop.permute.xlu1 %877 }
 0x6b1   : > { %v880_v38 = vadd.f32 %v878_v37, %v870_v36 }
 0x6b3   : > { %1083 = vtanh.f32 %v880_v38  ;;  %935 = vrot.lane.b32.xlu1 %v880_v38, %s1099_s20 }
 0x6bd   : > { %v1084_v39 = vpop.eup %1083 }
 0x6be   : > { %883 = vrot.lane.b32.xlu0 %v1084_v39, %s1098_s21 }
 0x6c1   : > { %v909_v40 = vpop.permute.xlu1 %908 }
 0x6c2   : > { %899 = vperm.xlu0 %1049, %v1255_v41  }
 0x6c6   : > { %902 = vperm.xlu0 %1049, %v1257_v42   ;;  %v926_v42 = vrot.slane %v909_v40, %v1234_v56 }
 0x6ca   : > { %905 = vperm.xlu0 %1049, %v1261_v46  }
 0x725   : > { %v936_v43 = vpop.permute.xlu1 %935 }
 0x726   : > { %938 = vst.msk [vmem:[#allocation3] sm:$0x3] %vm892_vm8, %v936_v43 }
 0x730   : > { %v884_v44 = vpop.permute.xlu0 %883 }
 0x731   : > { %v886_v45 = vmul.f32 %v1082_v32, %v884_v44 }
 0x733   : > { %888 = vrot.lane.b32.xlu0 %v886_v45, %s1097_s24 }
 0x741   : > { %v900_v47 = vpop.permute.xlu0 %899 }
 0x742   : > { %v913_v21 = vrot.slane %v900_v47, %v1231_v55 }
 0x745   : > { %v903_v48 = vpop.permute.xlu0 %902 }
 0x746   : > { %v917_v49 = vrot.slane %v903_v48, %v1234_v56 }
 0x748   : > { %v918_v50 = vsel %vm529_vm3, %v917_v49, %v913_v21 }
 0x749   : > { %v906_v41 = vpop.permute.xlu0 %905 }
 0x74a   : > { %v922_v46 = vrot.slane %v906_v41, %v1231_v55 }
 0x74c   : > { %v927_v51 = vsel %vm529_vm3, %v926_v42, %v922_v46 }
 0x74d   : > { %v928_v52 = vsel %vm540_vm4, %v927_v51, %v918_v50 }
 0x74e   : > { %v930_v53 = vsel %vm656_vm6, %v928_v52, 0.0 }
 0x74f   : > { %932 = vst [vmem:[%s931_s25] sm:$0x3] %v930_v53 }
 0x7a5   : > { %v889_v56 = vpop.permute.xlu0 %888 }
 0x7a6   : > { %893 = vst.msk [vmem:[%s891_s27] sm:$0x3] %vm892_vm8, %v889_v56  ;;  %933 = vst.msk [vmem:[#allocation2] sm:$0x3] %vm892_vm8, %v889_v56 }
 0x7a7 PF: > { %s24_s19 = sadd.s32 1, %s1091_s19  }
 0x7a8   : > { %p21_p4 = scmp.ge.s32.totalorder %s24_s19, 10  }
 0x7aa   :  { %23 = sbr.rel (!%p21_p4) target bundleno = 3 (0x3), region = 98 }

</bundles_post_ra>
